<compile_context>
chip_gen: v5e
topology: v5e:2x2
jax: 0.10.0
libtpu: 0.0.40
codegen_flags: <defaults>
</compile_context>

<pallas_src>
import jax
import jax.numpy as jnp
from jax.experimental import pallas as pl
from jax.experimental.pallas import tpu as pltpu


def _target_block_bytes():
    # Size blocks so (in + out) x 2 pipeline buffers = 4 blocks in flight fit
    # comfortably in scoped VMEM on every generation (v7x: 64 MiB physical,
    # v5e/v6e: 128 MiB).  ~4-8 MiB blocks already reach ~85% of the HBM
    # streaming roofline, so there is no need to push further.
    try:
        vmem = pltpu.get_tpu_info().vmem_capacity_bytes
    except Exception:  # interpret mode / query unavailable -> conservative
        vmem = 64 << 20
    return int(max(1 << 20, min(8 << 20, vmem // 16)))


def _specaug_kernel(bounds_ref, x_ref, o_ref):
    # bounds_ref: SMEM int32 (8,) = [fs1, fe1, ts1, te1, fs2, fe2, ts2, te2]
    #             (second window is zero-width when only one aug pass applies)
    # x_ref / o_ref: VMEM (TN, F, T) block of the flattened (B*C, F, T) input.
    F, T = x_ref.shape[-2], x_ref.shape[-1]
    f_idx = jax.lax.broadcasted_iota(jnp.int32, (F, 1), 0)
    t_idx = jax.lax.broadcasted_iota(jnp.int32, (1, T), 1)
    keep_f = jnp.ones((F, 1), dtype=jnp.bool_)
    keep_t = jnp.ones((1, T), dtype=jnp.bool_)
    for p in range(2):  # static unroll over the (up to) 2 mask passes
        fs, fe = bounds_ref[4 * p + 0], bounds_ref[4 * p + 1]
        ts, te = bounds_ref[4 * p + 2], bounds_ref[4 * p + 3]
        keep_f = keep_f & jnp.logical_not((f_idx >= fs) & (f_idx < fe))
        keep_t = keep_t & jnp.logical_not((t_idx >= ts) & (t_idx < te))
    keep = (keep_f & keep_t)[None, :, :]          # (1, F, T) -> broadcast over TN
    x = x_ref[...]
    o_ref[...] = jnp.where(keep, x, jnp.zeros((), x.dtype))


def specaugment_apply(x, bounds):
    """x: (B, C, F, T) float; bounds: (8,) int32 = two [fs, fe, ts, te] windows."""
    B, C, F, T = x.shape
    N = B * C
    xf = x.reshape(N, F, T)

    # Block many spectrograms per grid step (pure HBM-streaming op).
    spec_bytes = F * T * jnp.dtype(x.dtype).itemsize
    tn = int(max(1, min(N, _target_block_bytes() // max(spec_bytes, 1))))
    grid = (pl.cdiv(N, tn),)

    out = pl.pallas_call(
        _specaug_kernel,
        out_shape=jax.ShapeDtypeStruct((N, F, T), x.dtype),
        grid_spec=pltpu.PrefetchScalarGridSpec(
            num_scalar_prefetch=1,
            grid=grid,
            # Last two block dims are the full (F, T) extents -> always legal;
            # for realistic spectrograms T (time frames) is the long, lane-dense
            # axis.  Only the leading batch axis is tiled.
            in_specs=[pl.BlockSpec((tn, F, T), lambda n, bounds: (n, 0, 0))],
            out_specs=pl.BlockSpec((tn, F, T), lambda n, bounds: (n, 0, 0)),
        ),
        compiler_params=pltpu.CompilerParams(
            # parallel batch axis -> sharded across both TensorCores on v7x
            dimension_semantics=("parallel",),
            vmem_limit_bytes=48 * 1024 * 1024,
        ),
    )(bounds, xf)
    return out.reshape(B, C, F, T)


def _sample_axis_mask(key, axis_size, mask_param):
    # Mirrors torchaudio.functional.mask_along_axis:
    #   value     = rand() * mask_param
    #   min_value = rand() * (axis_size - value)
    #   mask [int(min_value), int(min_value + value)) is zeroed.
    k1, k2 = jax.random.split(key)
    value = jax.random.uniform(k1) * mask_param
    min_value = jax.random.uniform(k2) * (axis_size - value)
    start = jnp.floor(min_value).astype(jnp.int32)
    end = jnp.floor(min_value + value).astype(jnp.int32)
    return start, end


class SpecAugment:
    """JAX/Pallas port of the PyTorch SpecAugment module (forward pass)."""

    def __init__(self, rate, policy=3, freq_mask=2, time_mask=4):
        self.rate = rate  # kept for parity; unused in forward (as in original)
        self.policy = policy
        self.freq_mask = freq_mask
        self.time_mask = time_mask

    def __call__(self, x, key):
        _, _, F, T = x.shape
        kp, kf1, kt1, kf2, kt2 = jax.random.split(key, 5)

        # Always sample both passes (traceable / jittable); gate the second
        # pass with a traced coin instead of a host-sync float() branch.
        fs1, fe1 = _sample_axis_mask(kf1, F, self.freq_mask)
        ts1, te1 = _sample_axis_mask(kt1, T, self.time_mask)
        fs2, fe2 = _sample_axis_mask(kf2, F, self.freq_mask)
        ts2, te2 = _sample_axis_mask(kt2, T, self.time_mask)

        if self.policy == 1:
            second = jnp.int32(0)
        elif self.policy == 2:
            second = jnp.int32(1)
        else:
            # policy3: prob > 0.5 -> policy1 (1 pass), else policy2 (2 passes)
            second = (jax.random.uniform(kp) <= 0.5).astype(jnp.int32)

        pass1 = jnp.stack([fs1, fe1, ts1, te1]).astype(jnp.int32)
        pass2 = jnp.stack([fs2, fe2, ts2, te2]).astype(jnp.int32) * second
        bounds = jnp.concatenate([pass1, pass2])
        return specaugment_apply(x, bounds)


if __name__ == "__main__":
    key = jax.random.PRNGKey(0)
    kx, kaug = jax.random.split(key)
    # (batch=2, channel=4, freq=16, time=16) float32 spectrogram batch
    x = jax.random.normal(kx, (2, 4, 16, 16), dtype=jnp.float32)

    aug = SpecAugment(rate=0.5, policy=3, freq_mask=2, time_mask=4)
    apply_fn = jax.jit(lambda xx, kk: aug(xx, kk))  # fully traceable (no host sync)
    y = jax.block_until_ready(apply_fn(x, kaug))

    assert y.shape == x.shape and y.dtype == x.dtype
    # masked positions must be exactly zero; unmasked positions untouched
    assert bool(jnp.all(jnp.logical_or(y == x, y == 0.0)))
    print("KERNEL_OK")
</pallas_src>

<mosaic_0001>
module attributes {stable_mosaic.version = 11 : i64} {
  func.func @_specaug_kernel(%arg0: i32, %arg1: memref<8xi32, #tpu.memory_space<smem>>, %arg2: memref<8x16x16xf32, #tpu.memory_space<vmem>>, %arg3: memref<8x16x16xf32, #tpu.memory_space<vmem>>) attributes {dimension_semantics = [#tpu.dimension_semantics<parallel>], iteration_bounds = array<i64: 1>, scalar_prefetch = 1 : i64, scratch_operands = 0 : i64, tpu.core_type = #tpu.core_type<tc>, window_params = [{transform_indices = @transform_0, window_bounds = array<i64: 8, 16, 16>}, {transform_indices = @transform_1, window_bounds = array<i64: 8, 16, 16>}]} {
    %0 = tpu.iota {dimensions = array<i32: 0>} : vector<16x1xi32>
    %1 = tpu.iota {dimensions = array<i32: 1>} : vector<1x16xi32>
    %true = arith.constant true
    %2 = vector.broadcast %true : i1 to vector<16x1xi1>
    %true_0 = arith.constant true
    %3 = vector.broadcast %true_0 : i1 to vector<1x16xi1>
    %c0 = arith.constant 0 : index
    %4 = memref.load %arg1[%c0] : memref<8xi32, #tpu.memory_space<smem>>
    %c1 = arith.constant 1 : index
    %5 = memref.load %arg1[%c1] : memref<8xi32, #tpu.memory_space<smem>>
    %c2 = arith.constant 2 : index
    %6 = memref.load %arg1[%c2] : memref<8xi32, #tpu.memory_space<smem>>
    %c3 = arith.constant 3 : index
    %7 = memref.load %arg1[%c3] : memref<8xi32, #tpu.memory_space<smem>>
    %8 = vector.broadcast %4 : i32 to vector<16x1xi32>
    %9 = arith.cmpi sge, %0, %8 : vector<16x1xi32>
    %10 = vector.broadcast %5 : i32 to vector<16x1xi32>
    %11 = arith.cmpi slt, %0, %10 : vector<16x1xi32>
    %12 = arith.andi %9, %11 : vector<16x1xi1>
    %cst = arith.constant dense<true> : vector<16x1xi1>
    %13 = arith.xori %12, %cst : vector<16x1xi1>
    %14 = arith.andi %2, %13 : vector<16x1xi1>
    %15 = vector.broadcast %6 : i32 to vector<1x16xi32>
    %16 = arith.cmpi sge, %1, %15 : vector<1x16xi32>
    %17 = vector.broadcast %7 : i32 to vector<1x16xi32>
    %18 = arith.cmpi slt, %1, %17 : vector<1x16xi32>
    %19 = arith.andi %16, %18 : vector<1x16xi1>
    %cst_1 = arith.constant dense<true> : vector<1x16xi1>
    %20 = arith.xori %19, %cst_1 : vector<1x16xi1>
    %21 = arith.andi %3, %20 : vector<1x16xi1>
    %c4 = arith.constant 4 : index
    %22 = memref.load %arg1[%c4] : memref<8xi32, #tpu.memory_space<smem>>
    %c5 = arith.constant 5 : index
    %23 = memref.load %arg1[%c5] : memref<8xi32, #tpu.memory_space<smem>>
    %c6 = arith.constant 6 : index
    %24 = memref.load %arg1[%c6] : memref<8xi32, #tpu.memory_space<smem>>
    %c7 = arith.constant 7 : index
    %25 = memref.load %arg1[%c7] : memref<8xi32, #tpu.memory_space<smem>>
    %26 = vector.broadcast %22 : i32 to vector<16x1xi32>
    %27 = arith.cmpi sge, %0, %26 : vector<16x1xi32>
    %28 = vector.broadcast %23 : i32 to vector<16x1xi32>
    %29 = arith.cmpi slt, %0, %28 : vector<16x1xi32>
    %30 = arith.andi %27, %29 : vector<16x1xi1>
    %cst_2 = arith.constant dense<true> : vector<16x1xi1>
    %31 = arith.xori %30, %cst_2 : vector<16x1xi1>
    %32 = arith.andi %14, %31 : vector<16x1xi1>
    %33 = vector.broadcast %24 : i32 to vector<1x16xi32>
    %34 = arith.cmpi sge, %1, %33 : vector<1x16xi32>
    %35 = vector.broadcast %25 : i32 to vector<1x16xi32>
    %36 = arith.cmpi slt, %1, %35 : vector<1x16xi32>
    %37 = arith.andi %34, %36 : vector<1x16xi1>
    %cst_3 = arith.constant dense<true> : vector<1x16xi1>
    %38 = arith.xori %37, %cst_3 : vector<1x16xi1>
    %39 = arith.andi %21, %38 : vector<1x16xi1>
    %40 = vector.broadcast %32 : vector<16x1xi1> to vector<16x16xi1>
    %41 = vector.broadcast %39 : vector<1x16xi1> to vector<16x16xi1>
    %42 = arith.andi %40, %41 : vector<16x16xi1>
    %43 = vector.shape_cast %42 : vector<16x16xi1> to vector<1x16x16xi1>
    %c0_4 = arith.constant 0 : index
    %c0_5 = arith.constant 0 : index
    %c0_6 = arith.constant 0 : index
    %44 = vector.load %arg2[%c0_4, %c0_5, %c0_6] : memref<8x16x16xf32, #tpu.memory_space<vmem>>, vector<8x16x16xf32>
    %cst_7 = arith.constant 0.000000e+00 : f32
    %45 = vector.shape_cast %43 : vector<1x16x16xi1> to vector<1x16x16xi1>
    %46 = vector.broadcast %45 : vector<1x16x16xi1> to vector<8x16x16xi1>
    %47 = vector.broadcast %cst_7 : f32 to vector<8x16x16xf32>
    %48 = arith.select %46, %44, %47 : vector<8x16x16xi1>, vector<8x16x16xf32>
    %c0_8 = arith.constant 0 : index
    %c0_9 = arith.constant 0 : index
    %c0_10 = arith.constant 0 : index
    %49 = vector.load %arg3[%c0_8, %c0_9, %c0_10] : memref<8x16x16xf32, #tpu.memory_space<vmem>>, vector<8x16x16xf32>
    tpu.vector_store %arg3[%c0_8, %c0_9, %c0_10], %48 {strides = array<i32>} : memref<8x16x16xf32, #tpu.memory_space<vmem>>, vector<8x16x16xf32>,
    return
  }
  func.func @transform_0(%arg0: i32, %arg1: memref<8xi32, #tpu.memory_space<smem>>) -> (i32, i32, i32) {
    %c0_i32 = arith.constant 0 : i32
    %c0_i32_0 = arith.constant 0 : i32
    %c0_i32_1 = arith.constant 0 : i32
    return %arg0, %c0_i32, %c0_i32_0 : i32, i32, i32
  }
  func.func @transform_1(%arg0: i32, %arg1: memref<8xi32, #tpu.memory_space<smem>>) -> (i32, i32, i32) {
    %c0_i32 = arith.constant 0 : i32
    %c0_i32_0 = arith.constant 0 : i32
    %c0_i32_1 = arith.constant 0 : i32
    return %arg0, %c0_i32, %c0_i32_0 : i32, i32, i32
  }
}

</mosaic_0001>

<bundles_post_ra>
// kernel: _lambda_.1
= control target key start
LH: loop header
LB: loop body
LE: loop exit
PB: predicated region body
PF: predicated region fallthrough
CT: control target
= control target key end

     0   :  { %s198_s12 = smov [#allocation3]   ;;  %s381_s0 = inlined_call_operand.vmem [shape: s32[8], index: 0, kind: input, shape index: {}]   ;;  %s382_s1 = inlined_call_operand.vmem [shape: f32[8,16,16], index: 1, kind: input, shape index: {}]   ;;  %s383_s2 = inlined_call_operand.hbm [shape: f32[8,16,16], index: 2, kind: output, shape index: {}]  }
   0x1   :  { %s8_s11 = sshll.u32 %s381_s0, 4  ;;  %s9_s11 = int_to_ptr.vmem [resolvable:$true] %s8_s11 }
   0x2   :  { %11 = dma.vmem_to_smem %s9_s11, 16, %s198_s12, [#allocation2] }
   0x3   :  { %194 = dma.done.wait [#allocation2], 16 }
   0x4   :  { %195 = vsyncadd [#allocation2], 4294967280 }
   0x5   :  { %14 = sfence }
   0x6   :  { %s222_s13 = sld [smem:[#allocation3]]  ;;  %v18_v0 = vlaneseq }
   0x7   :  { %s224_s14 = sld [smem:[#allocation3 + $0x1]] }
   0x8   :  { %s146_s15 = sld [smem:[#allocation3 + $0x2]]  ;;  %v19_v1 = vshrl.u32 %v18_v0, 7  ;;  %v22_v2 = vand.u32 127, %v18_v0 }
   0x9   :  { %s147_s16 = sld [smem:[#allocation3 + $0x3]] }
   0xa   :  { %s226_s17 = sld [smem:[#allocation3 + $0x4]] }
   0xb   :  { %s228_s18 = sld [smem:[#allocation3 + $0x5]] }
   0xc   :  { %v27_v3 = vstv %s222_s13  ;;  %s150_s0 = sld [smem:[#allocation3 + $0x6]] }
   0xd   :  { %15 = vsyncpa [#allocation5], 0  ;;  %vm28_vm0 = vcmp.ge.s32.totalorder %v19_v1, %v27_v3  ;;  %v30_v4 = vstv %s224_s14  ;;  %s151_s19 = sld [smem:[#allocation3 + $0x7]]  ;;  %vm199_vm4 = vmmov 1   ;;  %v20_v13 = vadd.s32 8, %v19_v1  ;;  %v74_v17 = vld [vmem:[%s382_s1] sm:$0xff] }
   0xe   :  { %vm31_vm1 = vcmp.lt.s32.totalorder %v19_v1, %v30_v4  ;;  %v37_v5 = vstv %s146_s15  ;;  %v76_v20 = vld [vmem:[%s382_s1 + $0x10] sm:$0xff]  ;;  %v78_v21 = vld [vmem:[%s382_s1 + $0x20] sm:$0xff]  ;;  %v200_v22 = vmov 0   ;;  %v75_v32 = vld [vmem:[%s382_s1 + $0x8] sm:$0xff]  ;;  %s201_s23 = smov [#allocation4]   ;;  %s133_s27 = sshll.u32 %s383_s2, 4  ;;  %s134_s27 = int_to_ptr.hbm [resolvable:$true] %s133_s27 }
   0xf   :  { %vm33_vm2 = vmand %vm28_vm0, %vm31_vm1  ;;  %vm38_vm3 = vcmp.ge.s32.totalorder %v22_v2, %v37_v5  ;;  %v39_v6 = vstv %s147_s16  ;;  %v80_v24 = vld [vmem:[%s382_s1 + $0x30] sm:$0xff]  ;;  %v82_v26 = vld [vmem:[%s382_s1 + $0x40] sm:$0xff]  ;;  %s131_s24 = sshll.u32 %s201_s23, 4  ;;  %s203_s2 = smov 8   ;;  %s132_s24 = int_to_ptr.vmem [resolvable:$true] %s131_s24 }
  0x10   :  { %vm233_vm5 = vmxor %vm33_vm2, %vm199_vm4  ;;  %vm40_vm6 = vcmp.lt.s32.totalorder %v22_v2, %v39_v6  ;;  %v47_v8 = vstv %s226_s17  ;;  %vm252_vm2 = vcmp.ge.s32.totalorder %v20_v13, %v27_v3  ;;  %v84_v30 = vld [vmem:[%s382_s1 + $0x50] sm:$0xff]  ;;  %v77_v34 = vld [vmem:[%s382_s1 + $0x18] sm:$0xff] }
  0x11   :  { %vm41_vm7 = vmand %vm38_vm3, %vm40_vm6  ;;  %vm48_vm8 = vcmp.ge.s32.totalorder %v19_v1, %v47_v8  ;;  %v50_v9 = vstv %s228_s18  ;;  %vm256_vm3 = vcmp.lt.s32.totalorder %v20_v13, %v30_v4  ;;  %v79_v35 = vld [vmem:[%s382_s1 + $0x28] sm:$0xff]  ;;  %v81_v38 = vld [vmem:[%s382_s1 + $0x38] sm:$0xff] }
  0x12   :  { %vm240_vm9 = vmxor %vm41_vm7, %vm199_vm4  ;;  %vm51_vm10 = vcmp.lt.s32.totalorder %v19_v1, %v50_v9  ;;  %v59_v11 = vstv %s150_s0  ;;  %vm272_vm7 = vcmp.ge.s32.totalorder %v20_v13, %v47_v8  ;;  %v83_v39 = vld [vmem:[%s382_s1 + $0x48] sm:$0xff]  ;;  %v85_v43 = vld [vmem:[%s382_s1 + $0x58] sm:$0xff] }
  0x13   :  { %vm53_vm11 = vmand %vm48_vm8, %vm51_vm10  ;;  %vm60_vm12 = vcmp.ge.s32.totalorder %v22_v2, %v59_v11  ;;  %v61_v12 = vstv %s151_s19  ;;  %vm276_vm8 = vcmp.lt.s32.totalorder %v20_v13, %v50_v9  ;;  %vm110_vm10 = vcmask 130048   ;;  %v86_v45 = vld [vmem:[%s382_s1 + $0x60] sm:$0xff]  ;;  %v87_v47 = vld [vmem:[%s382_s1 + $0x68] sm:$0xff] }
  0x14   :  { %vm55_vm13 = vmxor %vm53_vm11, %vm199_vm4  ;;  %vm62_vm14 = vcmp.lt.s32.totalorder %v22_v2, %v61_v12  ;;  %v88_v49 = vld [vmem:[%s382_s1 + $0x70] sm:$0xff]  ;;  %v89_v51 = vld [vmem:[%s382_s1 + $0x78] sm:$0xff]  ;;  %s202_s1 = smov 128  }
  0x15   :  { %vm57_vm15 = vmand %vm233_vm5, %vm55_vm13 }
  0x16   :  { %vm63_vm0 = vmand %vm60_vm12, %vm62_vm14 }
  0x17   :  { %vm248_vm1 = vmxor %vm63_vm0, %vm199_vm4 }
  0x18   :  { %vm65_vm6 = vmand %vm240_vm9, %vm248_vm1 }
  0x19   :  { %vm72_vm5 = vmand %vm57_vm15, %vm65_vm6 }
  0x1a   :  { %v90_v23 = vsel %vm72_vm5, 1, %v200_v22  ;;  %vm34_vm11 = vmand %vm252_vm2, %vm256_vm3 }
  0x1b   :  { %vm92_vm12 = vcmp.eq.s32.totalorder %v90_v23, 1  ;;  %vm294_vm13 = vmxor %vm34_vm11, %vm199_vm4 }
  0x1c   :  { %v94_v27 = vsel %vm92_vm12, %v74_v17, 0.0  ;;  %vm54_vm14 = vmand %vm272_vm7, %vm276_vm8  ;;  %v96_v28 = vsel %vm92_vm12, %v76_v20, 0.0  ;;  %v98_v29 = vsel %vm92_vm12, %v78_v21, 0.0  ;;  %v100_v31 = vsel %vm92_vm12, %v80_v24, 0.0 }
  0x1d   :  { %111 = vst.msk [vmem:[#allocation4] sm:$0xff] %vm110_vm10, %v94_v27  ;;  %vm56_vm15 = vmxor %vm54_vm14, %vm199_vm4  ;;  %v102_v33 = vsel %vm92_vm12, %v82_v26, 0.0  ;;  %v104_v36 = vsel %vm92_vm12, %v84_v30, 0.0  ;;  %v106_v50 = vsel %vm92_vm12, %v86_v45, 0.0  ;;  %v108_v53 = vsel %vm92_vm12, %v88_v49, 0.0 }
  0x1e   :  { %vm58_vm0 = vmand %vm294_vm13, %vm56_vm15  ;;  %113 = vst.msk [vmem:[#allocation4 + $0x10] sm:$0xff] %vm110_vm10, %v96_v28 }
  0x1f   :  { %vm73_vm2 = vmand %vm58_vm0, %vm65_vm6  ;;  %115 = vst.msk [vmem:[#allocation4 + $0x20] sm:$0xff] %vm110_vm10, %v98_v29 }
  0x20   :  { %v91_v37 = vsel %vm73_vm2, 1, %v200_v22  ;;  %117 = vst.msk [vmem:[#allocation4 + $0x30] sm:$0xff] %vm110_vm10, %v100_v31 }
  0x21   :  { %vm93_vm4 = vcmp.eq.s32.totalorder %v91_v37, 1  ;;  %119 = vst.msk [vmem:[#allocation4 + $0x40] sm:$0xff] %vm110_vm10, %v102_v33 }
  0x22   :  { %v95_v40 = vsel %vm93_vm4, %v75_v32, 0.0  ;;  %v97_v41 = vsel %vm93_vm4, %v77_v34, 0.0  ;;  %v99_v42 = vsel %vm93_vm4, %v79_v35, 0.0  ;;  %121 = vst.msk [vmem:[#allocation4 + $0x50] sm:$0xff] %vm110_vm10, %v104_v36  ;;  %v101_v44 = vsel %vm93_vm4, %v81_v38, 0.0 }
  0x23   :  { %112 = vst.msk [vmem:[#allocation4 + $0x8] sm:$0xff] %vm110_vm10, %v95_v40  ;;  %v103_v46 = vsel %vm93_vm4, %v83_v39, 0.0  ;;  %v105_v48 = vsel %vm93_vm4, %v85_v43, 0.0  ;;  %v107_v52 = vsel %vm93_vm4, %v87_v47, 0.0  ;;  %v109_v54 = vsel %vm93_vm4, %v89_v51, 0.0 }
  0x24   :  { %114 = vst.msk [vmem:[#allocation4 + $0x18] sm:$0xff] %vm110_vm10, %v97_v41 }
  0x25   :  { %116 = vst.msk [vmem:[#allocation4 + $0x28] sm:$0xff] %vm110_vm10, %v99_v42 }
  0x26   :  { %118 = vst.msk [vmem:[#allocation4 + $0x38] sm:$0xff] %vm110_vm10, %v101_v44 }
  0x27   :  { %120 = vst.msk [vmem:[#allocation4 + $0x48] sm:$0xff] %vm110_vm10, %v103_v46 }
  0x28   :  { %122 = vst.msk [vmem:[#allocation4 + $0x58] sm:$0xff] %vm110_vm10, %v105_v48 }
  0x29   :  { %123 = vst.msk [vmem:[#allocation4 + $0x60] sm:$0xff] %vm110_vm10, %v106_v50 }
  0x2a   :  { %124 = vst.msk [vmem:[#allocation4 + $0x68] sm:$0xff] %vm110_vm10, %v107_v52 }
  0x2b   :  { %125 = vst.msk [vmem:[#allocation4 + $0x70] sm:$0xff] %vm110_vm10, %v108_v53 }
  0x2c   :  { %126 = vst.msk [vmem:[#allocation4 + $0x78] sm:$0xff] %vm110_vm10, %v109_v54 }
  0x2d   :  { %139 = dma.vmem_to_hbm [thread:$0]  %s132_s24, 2048, %s134_s27, [#allocation5], %s202_s1, %s202_s1, %s203_s2  }
  0x2e   :  { %196 = dma.done.wait [#allocation5], 2048  }
  0x2f   :  { %197 = vsyncadd [#allocation5], 4294965248 }
  0x30   :  { %144 = vsyncpa [#allocation5], 1 }

</bundles_post_ra>
